<compile_context>
chip_gen: v6e
topology: v6e:2x2x1
jax: 0.10.0
libtpu: 0.0.40
codegen_flags: <defaults>
</compile_context>

<pallas_src>
import jax
import jax.numpy as jnp
import numpy as np
from jax.experimental import pallas as pl
from jax.experimental.pallas import tpu as pltpu

EPS = 1e-5
VMEM_LIMIT = 32 * 1024 * 1024  # safe scoped-VMEM request on v5e / v6e / v7x


def _round_up(x, m):
    return (x + m - 1) // m * m


# ------------------- Pass 1: conv matmul + per-tile channel statistics ---------------------
def conv_stats_kernel(patch_ref, w_ref, sum_ref, ssq_ref):
    """patch_ref: (TM, Kd) bf16 im2col tile, w_ref: (Kd, C) bf16 weight.
    sum_ref / ssq_ref: (8, C) f32 per-tile partial stats (replicated across sublanes so the
    output block keeps an 8-aligned second-minor dim)."""
    y = jnp.dot(patch_ref[...], w_ref[...], preferred_element_type=jnp.float32)
    part_sum = jnp.sum(y, axis=0, keepdims=True)          # zero-padded rows contribute 0
    part_ssq = jnp.sum(y * y, axis=0, keepdims=True)
    sum_ref[...] = jnp.broadcast_to(part_sum, sum_ref.shape)
    ssq_ref[...] = jnp.broadcast_to(part_ssq, ssq_ref.shape)


# ------------------- Pass 2: conv matmul + folded BN affine + ReLU -------------------------
def conv_bn_act_kernel(patch_ref, w_ref, scale_ref, shift_ref, out_ref):
    """Recompute the cheap conv matmul (avoids storing/reloading the f32 intermediate),
    then apply the pre-folded BatchNorm scale/shift and ReLU in one fused store."""
    y = jnp.dot(patch_ref[...], w_ref[...], preferred_element_type=jnp.float32)
    out_ref[...] = jnp.maximum(y * scale_ref[...] + shift_ref[...], 0.0)


# ------------------------------------- wrapper ---------------------------------------------
def sequence_fc_forward(x_ncl, weight_oik, gamma, beta, *, tm=512):
    """Conv1d(in,out,3,1,1) + BatchNorm1d(batch stats) + ReLU.  x: (N, Cin, L) -> (N, Cout, L)."""
    N, Cin, L = x_ncl.shape
    Cout, _, K = weight_oik.shape            # PyTorch Conv1d weight: (out_ch, in_ch, kernel_size)
    stride, pad = 1, 1
    Lo = (L + 2 * pad - K) // stride + 1

    # NCL -> NLC, zero-pad the sequence, build im2col patches (M, K*Cin), column order (tap, cin).
    x = jnp.transpose(x_ncl, (0, 2, 1)).astype(jnp.float32)
    xp = jnp.pad(x, ((0, 0), (pad, pad), (0, 0)))
    cols = [xp[:, k:k + Lo * stride:stride, :] for k in range(K)]
    patches = jnp.concatenate(cols, axis=-1).reshape(N * Lo, K * Cin)
    # TODO(synk): move this im2col inside the kernel (halo DMA) to avoid the 3x HBM read amp.

    # Weight (Cout, Cin, K) -> (K*Cin, Cout) matching the patch column order.
    w_mat = jnp.transpose(weight_oik, (2, 1, 0)).reshape(K * Cin, Cout)

    M = N * Lo
    Kd = K * Cin
    TM = min(tm, _round_up(M, 8))            # (8,*)-aligned row tile
    Mp = _round_up(M, TM)
    nt = Mp // TM
    grid = (nt,)

    # bf16 MXU operands (f32 accumulation happens in-kernel); rows padded with zeros to Mp.
    patches_p = jnp.zeros((Mp, Kd), jnp.bfloat16).at[:M].set(patches.astype(jnp.bfloat16))
    w_b = w_mat.astype(jnp.bfloat16)

    # ---- pass 1: per-tile channel sum / sum-of-squares (fully parallel across M tiles) -----
    psum, pssq = pl.pallas_call(
        conv_stats_kernel,
        out_shape=(jax.ShapeDtypeStruct((nt * 8, Cout), jnp.float32),
                   jax.ShapeDtypeStruct((nt * 8, Cout), jnp.float32)),
        grid=grid,
        in_specs=[pl.BlockSpec((TM, Kd), lambda i: (i, 0)),
                  pl.BlockSpec((Kd, Cout), lambda i: (0, 0))],
        out_specs=(pl.BlockSpec((8, Cout), lambda i: (i, 0)),
                   pl.BlockSpec((8, Cout), lambda i: (i, 0))),
        compiler_params=pltpu.CompilerParams(
            dimension_semantics=("parallel",),
            vmem_limit_bytes=VMEM_LIMIT),
    )(patches_p, w_b)

    # ---- fold BN (batch stats, biased variance) into one per-channel scale/shift -----------
    csum = psum.reshape(nt, 8, Cout)[:, 0, :].sum(axis=0)
    cssq = pssq.reshape(nt, 8, Cout)[:, 0, :].sum(axis=0)
    mean = csum / M
    var = jnp.maximum(cssq / M - mean * mean, 0.0)
    scale = (gamma.astype(jnp.float32) * jax.lax.rsqrt(var + EPS)).reshape(1, Cout)
    shift = beta.astype(jnp.float32).reshape(1, Cout) - mean.reshape(1, Cout) * scale

    # ---- pass 2: conv recompute + normalize + ReLU (parallel across M tiles) ---------------
    out = pl.pallas_call(
        conv_bn_act_kernel,
        out_shape=jax.ShapeDtypeStruct((Mp, Cout), jnp.float32),
        grid=grid,
        in_specs=[pl.BlockSpec((TM, Kd), lambda i: (i, 0)),
                  pl.BlockSpec((Kd, Cout), lambda i: (0, 0)),
                  pl.BlockSpec((1, Cout), lambda i: (0, 0)),
                  pl.BlockSpec((1, Cout), lambda i: (0, 0))],
        out_specs=pl.BlockSpec((TM, Cout), lambda i: (i, 0)),
        compiler_params=pltpu.CompilerParams(
            dimension_semantics=("parallel",),
            vmem_limit_bytes=VMEM_LIMIT),
    )(patches_p, w_b, scale, shift)

    out = out[:M].reshape(N, Lo, Cout)
    return jnp.transpose(out, (0, 2, 1))     # NLC -> NCL


# -------------------------------- pure-JAX reference ---------------------------------------
def sequence_fc_forward_ref(x_ncl, weight_oik, gamma, beta):
    N, Cin, L = x_ncl.shape
    Cout, _, K = weight_oik.shape
    pad = 1
    xp = jnp.pad(x_ncl, ((0, 0), (0, 0), (pad, pad)))
    Lo = L + 2 * pad - K + 1
    y = jnp.zeros((N, Cout, Lo), jnp.float32)
    for k in range(K):
        y = y + jnp.einsum('ncl,oc->nol', xp[:, :, k:k + Lo], weight_oik[:, :, k])
    mean = jnp.mean(y, axis=(0, 2), keepdims=True)
    var = jnp.mean((y - mean) ** 2, axis=(0, 2), keepdims=True)   # biased, training-mode BN
    z = (y - mean) * jax.lax.rsqrt(var + EPS)
    z = z * gamma.reshape(1, -1, 1) + beta.reshape(1, -1, 1)
    return jnp.maximum(z, 0.0)


# ------------------------------------------ main -------------------------------------------
if __name__ == "__main__":
    N, in_ch, L = 2, 4, 16
    out_ch = 8

    key = jax.random.PRNGKey(0)
    kx, kw, kg, kb = jax.random.split(key, 4)
    x = jax.random.normal(kx, (N, in_ch, L), dtype=jnp.float32)
    w = 0.1 * jax.random.normal(kw, (out_ch, in_ch, 3), dtype=jnp.float32)
    gamma = 1.0 + 0.1 * jax.random.normal(kg, (out_ch,), dtype=jnp.float32)
    beta = 0.1 * jax.random.normal(kb, (out_ch,), dtype=jnp.float32)

    fwd = jax.jit(sequence_fc_forward)
    out = jax.block_until_ready(fwd(x, w, gamma, beta))
    ref = jax.block_until_ready(sequence_fc_forward_ref(x, w, gamma, beta))

    assert out.shape == (N, out_ch, L), out.shape
    # Tolerance accounts for the bf16 MXU operands (accumulation is f32).
    np.testing.assert_allclose(np.asarray(out), np.asarray(ref), rtol=3e-2, atol=3e-2)
    print("KERNEL_OK")
</pallas_src>

<mosaic_0001>
module attributes {stable_mosaic.version = 11 : i64} {
  func.func @conv_stats_kernel(%arg0: i32, %arg1: memref<32x12xbf16, #tpu.memory_space<vmem>>, %arg2: memref<12x8xbf16, #tpu.memory_space<vmem>>, %arg3: memref<8x8xf32, #tpu.memory_space<vmem>>, %arg4: memref<8x8xf32, #tpu.memory_space<vmem>>) attributes {dimension_semantics = [#tpu.dimension_semantics<parallel>], iteration_bounds = array<i64: 1>, scalar_prefetch = 0 : i64, scratch_operands = 0 : i64, tpu.core_type = #tpu.core_type<tc>, window_params = [{transform_indices = @transform_0, window_bounds = array<i64: 32, 12>}, {pipeline_mode = #tpu.pipeline_mode<synchronous>, transform_indices = @transform_1, window_bounds = array<i64: 12, 8>}, {transform_indices = @transform_2, window_bounds = array<i64: 8, 8>}, {transform_indices = @transform_3, window_bounds = array<i64: 8, 8>}]} {
    %c0 = arith.constant 0 : index
    %c0_0 = arith.constant 0 : index
    %0 = vector.load %arg1[%c0, %c0_0] : memref<32x12xbf16, #tpu.memory_space<vmem>>, vector<32x12xbf16>
    %c0_1 = arith.constant 0 : index
    %c0_2 = arith.constant 0 : index
    %1 = vector.load %arg2[%c0_1, %c0_2] : memref<12x8xbf16, #tpu.memory_space<vmem>>, vector<12x8xbf16>
    %cst = arith.constant dense<0.000000e+00> : vector<32x8xf32>
    %2 = tpu.matmul %0, %1, %cst {dimension_numbers = #tpu.dot_dimension_numbers<[1], [0], [0], [1], [0, 0, 1, 1], [], []>} : vector<32x12xbf16>, vector<12x8xbf16>, vector<32x8xf32> -> vector<32x8xf32>
    %cst_3 = arith.constant dense<0.000000e+00> : vector<8xf32>
    %3 = vector.multi_reduction <add>, %2, %cst_3 [0] : vector<32x8xf32> to vector<8xf32>
    %4 = vector.shape_cast %3 : vector<8xf32> to vector<1x8xf32>
    %5 = arith.mulf %2, %2 : vector<32x8xf32>
    %cst_4 = arith.constant dense<0.000000e+00> : vector<8xf32>
    %6 = vector.multi_reduction <add>, %5, %cst_4 [0] : vector<32x8xf32> to vector<8xf32>
    %7 = vector.shape_cast %6 : vector<8xf32> to vector<1x8xf32>
    %8 = vector.shape_cast %4 : vector<1x8xf32> to vector<1x8xf32>
    %9 = vector.broadcast %8 : vector<1x8xf32> to vector<8x8xf32>
    %c0_5 = arith.constant 0 : index
    %c0_6 = arith.constant 0 : index
    %10 = vector.load %arg3[%c0_5, %c0_6] : memref<8x8xf32, #tpu.memory_space<vmem>>, vector<8x8xf32>
    tpu.vector_store %arg3[%c0_5, %c0_6], %9 {strides = array<i32>} : memref<8x8xf32, #tpu.memory_space<vmem>>, vector<8x8xf32>,
    %11 = vector.shape_cast %7 : vector<1x8xf32> to vector<1x8xf32>
    %12 = vector.broadcast %11 : vector<1x8xf32> to vector<8x8xf32>
    %c0_7 = arith.constant 0 : index
    %c0_8 = arith.constant 0 : index
    %13 = vector.load %arg4[%c0_7, %c0_8] : memref<8x8xf32, #tpu.memory_space<vmem>>, vector<8x8xf32>
    tpu.vector_store %arg4[%c0_7, %c0_8], %12 {strides = array<i32>} : memref<8x8xf32, #tpu.memory_space<vmem>>, vector<8x8xf32>,
    return
  }
  func.func @transform_0(%arg0: i32) -> (i32, i32) {
    %c0_i32 = arith.constant 0 : i32
    %c0_i32_0 = arith.constant 0 : i32
    return %arg0, %c0_i32 : i32, i32
  }
  func.func @transform_1(%arg0: i32) -> (i32, i32) {
    %c0_i32 = arith.constant 0 : i32
    %c0_i32_0 = arith.constant 0 : i32
    %c0_i32_1 = arith.constant 0 : i32
    return %c0_i32, %c0_i32_0 : i32, i32
  }
  func.func @transform_2(%arg0: i32) -> (i32, i32) {
    %c0_i32 = arith.constant 0 : i32
    %c0_i32_0 = arith.constant 0 : i32
    return %arg0, %c0_i32 : i32, i32
  }
  func.func @transform_3(%arg0: i32) -> (i32, i32) {
    %c0_i32 = arith.constant 0 : i32
    %c0_i32_0 = arith.constant 0 : i32
    return %arg0, %c0_i32 : i32, i32
  }
}

module attributes {stable_mosaic.version = 11 : i64} {
  func.func @conv_bn_act_kernel(%arg0: i32, %arg1: memref<32x12xbf16, #tpu.memory_space<vmem>>, %arg2: memref<12x8xbf16, #tpu.memory_space<vmem>>, %arg3: memref<1x8xf32, #tpu.memory_space<vmem>>, %arg4: memref<1x8xf32, #tpu.memory_space<vmem>>, %arg5: memref<32x8xf32, #tpu.memory_space<vmem>>) attributes {dimension_semantics = [#tpu.dimension_semantics<parallel>], iteration_bounds = array<i64: 1>, scalar_prefetch = 0 : i64, scratch_operands = 0 : i64, tpu.core_type = #tpu.core_type<tc>, window_params = [{transform_indices = @transform_0, window_bounds = array<i64: 32, 12>}, {pipeline_mode = #tpu.pipeline_mode<synchronous>, transform_indices = @transform_1, window_bounds = array<i64: 12, 8>}, {pipeline_mode = #tpu.pipeline_mode<synchronous>, transform_indices = @transform_2, window_bounds = array<i64: 1, 8>}, {pipeline_mode = #tpu.pipeline_mode<synchronous>, transform_indices = @transform_3, window_bounds = array<i64: 1, 8>}, {transform_indices = @transform_4, window_bounds = array<i64: 32, 8>}]} {
    %c0 = arith.constant 0 : index
    %c0_0 = arith.constant 0 : index
    %0 = vector.load %arg1[%c0, %c0_0] : memref<32x12xbf16, #tpu.memory_space<vmem>>, vector<32x12xbf16>
    %c0_1 = arith.constant 0 : index
    %c0_2 = arith.constant 0 : index
    %1 = vector.load %arg2[%c0_1, %c0_2] : memref<12x8xbf16, #tpu.memory_space<vmem>>, vector<12x8xbf16>
    %cst = arith.constant dense<0.000000e+00> : vector<32x8xf32>
    %2 = tpu.matmul %0, %1, %cst {dimension_numbers = #tpu.dot_dimension_numbers<[1], [0], [0], [1], [0, 0, 1, 1], [], []>} : vector<32x12xbf16>, vector<12x8xbf16>, vector<32x8xf32> -> vector<32x8xf32>
    %c0_3 = arith.constant 0 : index
    %c0_4 = arith.constant 0 : index
    %3 = vector.load %arg3[%c0_3, %c0_4] : memref<1x8xf32, #tpu.memory_space<vmem>>, vector<1x8xf32>
    %4 = vector.broadcast %3 : vector<1x8xf32> to vector<32x8xf32>
    %5 = arith.mulf %2, %4 : vector<32x8xf32>
    %c0_5 = arith.constant 0 : index
    %c0_6 = arith.constant 0 : index
    %6 = vector.load %arg4[%c0_5, %c0_6] : memref<1x8xf32, #tpu.memory_space<vmem>>, vector<1x8xf32>
    %7 = vector.broadcast %6 : vector<1x8xf32> to vector<32x8xf32>
    %8 = arith.addf %5, %7 : vector<32x8xf32>
    %cst_7 = arith.constant 0.000000e+00 : f32
    %9 = vector.broadcast %cst_7 : f32 to vector<32x8xf32>
    %10 = arith.maximumf %8, %9 : vector<32x8xf32>
    %c0_8 = arith.constant 0 : index
    %c0_9 = arith.constant 0 : index
    %11 = vector.load %arg5[%c0_8, %c0_9] : memref<32x8xf32, #tpu.memory_space<vmem>>, vector<32x8xf32>
    tpu.vector_store %arg5[%c0_8, %c0_9], %10 {strides = array<i32>} : memref<32x8xf32, #tpu.memory_space<vmem>>, vector<32x8xf32>,
    return
  }
  func.func @transform_0(%arg0: i32) -> (i32, i32) {
    %c0_i32 = arith.constant 0 : i32
    %c0_i32_0 = arith.constant 0 : i32
    return %arg0, %c0_i32 : i32, i32
  }
  func.func @transform_1(%arg0: i32) -> (i32, i32) {
    %c0_i32 = arith.constant 0 : i32
    %c0_i32_0 = arith.constant 0 : i32
    %c0_i32_1 = arith.constant 0 : i32
    return %c0_i32, %c0_i32_0 : i32, i32
  }
  func.func @transform_2(%arg0: i32) -> (i32, i32) {
    %c0_i32 = arith.constant 0 : i32
    %c0_i32_0 = arith.constant 0 : i32
    %c0_i32_1 = arith.constant 0 : i32
    return %c0_i32, %c0_i32_0 : i32, i32
  }
  func.func @transform_3(%arg0: i32) -> (i32, i32) {
    %c0_i32 = arith.constant 0 : i32
    %c0_i32_0 = arith.constant 0 : i32
    %c0_i32_1 = arith.constant 0 : i32
    return %c0_i32, %c0_i32_0 : i32, i32
  }
  func.func @transform_4(%arg0: i32) -> (i32, i32) {
    %c0_i32 = arith.constant 0 : i32
    %c0_i32_0 = arith.constant 0 : i32
    return %arg0, %c0_i32 : i32, i32
  }
}

</mosaic_0001>

<bundles_post_ra>
// kernel: sequence_fc_forward.3
= control target key start
LH: loop header
LB: loop body
LE: loop exit
PB: predicated region body
PF: predicated region fallthrough
CT: control target
= control target key end

     0   :  { %vm46_vm0 = vcmask 1045504   ;;  %vm39_vm1 = vcmask 97280   ;;  %vm125_vm2 = vcmask 64512   ;;  %s206_s1 = inlined_call_operand.vmem [shape: bf16[12,8], index: 1, kind: input, shape index: {}]   ;;  %s207_s0 = inlined_call_operand.vmem [shape: bf16[32,12], index: 0, kind: input, shape index: {}]   ;;  %s208_s2 = inlined_call_operand.vmem [shape: f32[1,8], index: 2, kind: input, shape index: {}]   ;;  %s209_s3 = inlined_call_operand.vmem [shape: f32[1,8], index: 3, kind: input, shape index: {}]   ;;  %s210_s4 = inlined_call_operand.vmem [shape: f32[32,8], index: 4, kind: output, shape index: {}]  }
   0x1   :  { %v151_v0 = vld [vmem:[%s206_s1] sm:$0x3f]   ;;  %v153_v3 = vld [vmem:[%s207_s0 + $0x8] sm:$0xff]  }
   0x2   :  { %v152_v1 = vld [vmem:[%s207_s0] sm:$0xff]   ;;  %150 = vmatprep.subr.msk.bf16.mxu0 %vm46_vm0, %v151_v0  ;;  %v48_v2 = vsel %vm46_vm0, %v151_v0, 0 }
   0x3   :  { %145 = vmatpush3.bf16.msra.mxu0 %v48_v2  ;;  %146 = vmatprep.mubr.msk.bf16.mxu0 %vm39_vm1, %v152_v1  ;;  %v139_v4 = vld [vmem:[%s208_s2] ss:$0 sm:$0xff] }
   0x4   :  { %v140_v6 = vld [vmem:[%s209_s3] ss:$0 sm:$0xff] }
   0x6   :  { %147 = vmatmul.mubr.msk.bf16.vlgmr.msra.gmra.mxu0 %vm39_vm1, %v153_v3 }
  0xc6   :  { %v148_v5 = vpop.f32.mrf.mxu0 }
  0xc7   :  { %v108_v7 = vmul.f32 %v148_v5, %v139_v4 }
  0xc8   :  { %v84_v8 = vpop.f32.mrf.mxu0 }
  0xc9   :  { %v119_v9 = vadd.f32 %v140_v6, %v108_v7  ;;  %v106_v10 = vmul.f32 %v139_v4, %v84_v8 }
  0xca   :  { %v149_v11 = vpop.f32.mrf.mxu0 }
  0xcb   :  { %v123_v12 = vmax.f32 %v119_v9, 0.0  ;;  %v117_v13 = vadd.f32 %v140_v6, %v106_v10  ;;  %v109_v14 = vmul.f32 %v149_v11, %v139_v4 }
  0xcc   :  { %v87_v15 = vpop.f32.mrf.mxu0 }
  0xcd   :  { %128 = vst.msk [vmem:[%s210_s4 + $0x10] sm:$0xff] %vm125_vm2, %v123_v12  ;;  %v121_v16 = vmax.f32 %v117_v13, 0.0  ;;  %v120_v17 = vadd.f32 %v140_v6, %v109_v14  ;;  %v107_v18 = vmul.f32 %v139_v4, %v87_v15 }
  0xcf   :  { %126 = vst.msk [vmem:[%s210_s4] sm:$0xff] %vm125_vm2, %v121_v16  ;;  %v124_v19 = vmax.f32 %v120_v17, 0.0  ;;  %v118_v20 = vadd.f32 %v140_v6, %v107_v18 }
  0xd1   :  { %129 = vst.msk [vmem:[%s210_s4 + $0x18] sm:$0xff] %vm125_vm2, %v124_v19  ;;  %v122_v21 = vmax.f32 %v118_v20, 0.0 }
  0xd3   :  { %127 = vst.msk [vmem:[%s210_s4 + $0x8] sm:$0xff] %vm125_vm2, %v122_v21 }

// kernel: sequence_fc_forward.2
= control target key start
LH: loop header
LB: loop body
LE: loop exit
PB: predicated region body
PF: predicated region fallthrough
CT: control target
= control target key end

     0   :  { %vm42_vm0 = vcmask 1045504   ;;  %vm35_vm1 = vcmask 97280   ;;  %vm95_vm2 = vcmask 64512   ;;  %s199_s1 = inlined_call_operand.vmem [shape: bf16[12,8], index: 1, kind: input, shape index: {}]   ;;  %s200_s0 = inlined_call_operand.vmem [shape: bf16[32,12], index: 0, kind: input, shape index: {}]   ;;  %s201_s2 = inlined_call_operand.vmem [shape: f32[8,8], index: 2, kind: output, shape index: {0}]   ;;  %s202_s3 = inlined_call_operand.vmem [shape: f32[8,8], index: 3, kind: output, shape index: {1}]  }
   0x1   :  { %v151_v0 = vld [vmem:[%s199_s1] sm:$0x3f]   ;;  %v153_v3 = vld [vmem:[%s200_s0 + $0x8] sm:$0xff]  }
   0x2   :  { %v152_v1 = vld [vmem:[%s200_s0] sm:$0xff]   ;;  %150 = vmatprep.subr.msk.bf16.mxu0 %vm42_vm0, %v151_v0  ;;  %v44_v2 = vsel %vm42_vm0, %v151_v0, 0 }
   0x3   :  { %145 = vmatpush3.bf16.msra.mxu0 %v44_v2  ;;  %146 = vmatprep.mubr.msk.bf16.mxu0 %vm35_vm1, %v152_v1 }
   0x6   :  { %147 = vmatmul.mubr.msk.bf16.vlgmr.msra.gmra.mxu0 %vm35_vm1, %v153_v3 }
  0xc6   :  { %v148_v4 = vpop.f32.mrf.mxu0 }
  0xc7   :  { %v111_v9 = vmul.f32 %v148_v4, %v148_v4  ;;  %v99_v14 = vsel %vm95_vm2, %v148_v4, 0.0 }
  0xc8   :  { %v80_v5 = vpop.f32.mrf.mxu0 }
  0xc9   :  { %v109_v7 = vmul.f32 %v80_v5, %v80_v5  ;;  %v96_v10 = vsel %vm95_vm2, %v80_v5, 0.0  ;;  %v116_v20 = vsel %vm95_vm2, %v111_v9, 0.0 }
  0xca   :  { %v149_v6 = vpop.f32.mrf.mxu0 }
  0xcb   :  { %v113_v15 = vsel %vm95_vm2, %v109_v7, 0.0  ;;  %v112_v16 = vmul.f32 %v149_v6, %v149_v6  ;;  %v101_v21 = vsel %vm95_vm2, %v149_v6, 0.0 }
  0xcc   :  { %v83_v8 = vpop.f32.mrf.mxu0 }
  0xcd   :  { %v97_v11 = vsel %vm95_vm2, %v83_v8, 0.0  ;;  %v110_v12 = vmul.f32 %v83_v8, %v83_v8  ;;  %v118_v24 = vsel %vm95_vm2, %v112_v16, 0.0 }
  0xce   :  { %v98_v13 = vadd.f32 %v97_v11, %v96_v10 }
  0xcf   :  { %v114_v17 = vsel %vm95_vm2, %v110_v12, 0.0 }
  0xd0   :  { %v100_v18 = vadd.f32 %v99_v14, %v98_v13  ;;  %v115_v19 = vadd.f32 %v114_v17, %v113_v15 }
  0xd2   :  { %v102_v22 = vadd.f32 %v101_v21, %v100_v18  ;;  %v117_v23 = vadd.f32 %v116_v20, %v115_v19 }
  0xd4   :  { %v103_v25 = vrot.slane %v102_v22, 4  ;;  %v119_v26 = vadd.f32 %v118_v24, %v117_v23 }
  0xd6   :  { %v104_v27 = vadd.f32 %v103_v25, %v102_v22  ;;  %v120_v28 = vrot.slane %v119_v26, 4 }
  0xd8   :  { %v105_v29 = vrot.slane %v104_v27, 2  ;;  %v121_v30 = vadd.f32 %v120_v28, %v119_v26 }
  0xda   :  { %v106_v31 = vadd.f32 %v105_v29, %v104_v27  ;;  %v122_v32 = vrot.slane %v121_v30, 2 }
  0xdc   :  { %v107_v33 = vrot.slane %v106_v31, 1  ;;  %v123_v34 = vadd.f32 %v122_v32, %v121_v30 }
  0xde   :  { %v108_v35 = vadd.f32 %v107_v33, %v106_v31  ;;  %v124_v36 = vrot.slane %v123_v34, 1 }
  0xe0   :  { %v125_v37 = vadd.f32 %v124_v36, %v123_v34  ;;  %126 = vst.msk [vmem:[%s201_s2] sm:$0xff] %vm95_vm2, %v108_v35 }
  0xe2   :  { %127 = vst.msk [vmem:[%s202_s3] sm:$0xff] %vm95_vm2, %v125_v37 }

</bundles_post_ra>
